<compile_context>
chip_gen: v6e
topology: v6e:2x2x1
jax: 0.10.0
libtpu: 0.0.40
codegen_flags: <defaults>
</compile_context>

<pallas_src>
import jax
import jax.numpy as jnp
from jax.experimental import pallas as pl
from jax.experimental.pallas import tpu as pltpu


HIDDEN_DIM = 256
MAX_TILE_B = 1024    # batch tile cap; VMEM use stays far below scoped limits


def _round_up(x, m):
    return ((x + m - 1) // m) * m


def value_mlp_kernel(x_ref, w1_ref, b1_ref, w2_ref, b2_ref, w3_ref, b3_ref, o_ref):
    """Fused 3-layer MLP on one (tile_b, state_dim) batch tile.

    Layers 1-2: bf16 MXU matmuls with f32 accumulation, f32 bias + ReLU.
    Layer 3 (256 -> 1): f32 VPU multiply + lane reduction (no MXU, no padding).
    """
    x = x_ref[...].astype(jnp.bfloat16)                               # cast in-kernel
    h1 = jnp.dot(x, w1_ref[...], preferred_element_type=jnp.float32) + b1_ref[...]
    h1 = jnp.maximum(h1, 0.0)
    h2 = jnp.dot(h1.astype(jnp.bfloat16), w2_ref[...],
                 preferred_element_type=jnp.float32) + b2_ref[...]
    h2 = jnp.maximum(h2, 0.0)
    # Final layer: v = h2 @ w3 + b3, computed as a broadcast-mul + lane reduce.
    v = jnp.sum(h2 * w3_ref[...], axis=-1, keepdims=True) + b3_ref[...]
    o_ref[...] = v                                                     # (tile_b, 1) f32


def value_forward(state, params, *, max_tile_b=MAX_TILE_B):
    """state: [B, state_dim] f32 -> [B, 1] f32."""
    w1, b1, w2, b2, w3, b3 = params
    batch, state_dim = state.shape

    # Right-size the batch tile: bound padding waste and guarantee >= 2 grid
    # steps (when there is enough work) so v7x megacore gets both TCs busy.
    num_tiles = pl.cdiv(batch, max_tile_b)
    if num_tiles == 1 and batch > 8:
        num_tiles = 2
    tile_b = _round_up(pl.cdiv(batch, num_tiles), 8)
    padded_b = tile_b * num_tiles
    if padded_b != batch:
        state = jnp.pad(state, ((0, padded_b - batch), (0, 0)))

    grid = (num_tiles,)

    flops = 2 * padded_b * (state_dim * HIDDEN_DIM + HIDDEN_DIM * HIDDEN_DIM
                            + HIDDEN_DIM)                              # + final layer
    bytes_accessed = (
        padded_b * state_dim * 4                                       # x (f32)
        + (state_dim * HIDDEN_DIM + HIDDEN_DIM * HIDDEN_DIM) * 2       # W1, W2 (bf16)
        + (2 * HIDDEN_DIM + HIDDEN_DIM + 1) * 4                        # b1, b2, w3, b3 (f32)
        + padded_b * 4                                                 # out (f32)
    )

    out = pl.pallas_call(
        value_mlp_kernel,
        out_shape=jax.ShapeDtypeStruct((padded_b, 1), jnp.float32),
        grid_spec=pl.GridSpec(
            grid=grid,
            in_specs=[
                pl.BlockSpec((tile_b, state_dim), lambda i: (i, 0)),        # x: streamed
                pl.BlockSpec((state_dim, HIDDEN_DIM), lambda i: (0, 0)),    # W1: resident
                pl.BlockSpec((1, HIDDEN_DIM), lambda i: (0, 0)),            # b1
                pl.BlockSpec((HIDDEN_DIM, HIDDEN_DIM), lambda i: (0, 0)),   # W2
                pl.BlockSpec((1, HIDDEN_DIM), lambda i: (0, 0)),            # b2
                pl.BlockSpec((1, HIDDEN_DIM), lambda i: (0, 0)),            # w3 (row)
                pl.BlockSpec((1, 1), lambda i: (0, 0)),                     # b3
            ],
            out_specs=pl.BlockSpec((tile_b, 1), lambda i: (i, 0)),
        ),
        compiler_params=pltpu.CompilerParams(
            dimension_semantics=("parallel",),   # megacore sharding on v7x
        ),
        cost_estimate=pl.CostEstimate(
            flops=flops, transcendentals=0, bytes_accessed=bytes_accessed),
    )(state, w1, b1, w2, b2, w3, b3)

    return out[:batch]


def init_params(key, state_dim):
    """nn.Linear-style uniform(-1/sqrt(fan_in), +1/sqrt(fan_in)) init.

    Weights are stored as (in_features, out_features) so the kernel computes
    x @ W + b (equivalent to PyTorch's x @ W.T + b). W1/W2 are pre-cast to
    bf16 once here (MXU inputs); the final layer weights stay f32 since the
    kernel evaluates it on the VPU in f32.
    """
    ks = jax.random.split(key, 6)

    def lin(kw, kb, fan_in, fan_out):
        bound = 1.0 / jnp.sqrt(jnp.float32(fan_in))
        w = jax.random.uniform(kw, (fan_in, fan_out), jnp.float32, -bound, bound)
        b = jax.random.uniform(kb, (1, fan_out), jnp.float32, -bound, bound)
        return w, b

    w1, b1 = lin(ks[0], ks[1], state_dim, HIDDEN_DIM)
    w2, b2 = lin(ks[2], ks[3], HIDDEN_DIM, HIDDEN_DIM)
    w3, b3 = lin(ks[4], ks[5], HIDDEN_DIM, 1)

    w3_row = jnp.reshape(w3, (1, HIDDEN_DIM))   # (1, 256) row vector for the kernel
    b3 = jnp.reshape(b3, (1, 1))
    return (w1.astype(jnp.bfloat16), b1,
            w2.astype(jnp.bfloat16), b2,
            w3_row, b3)


def value_forward_ref(state, params):
    """Plain-JAX f32 reference (same bf16-stored weights, f32 math)."""
    w1, b1, w2, b2, w3, b3 = params
    h1 = jnp.maximum(state @ w1.astype(jnp.float32) + b1, 0.0)
    h2 = jnp.maximum(h1 @ w2.astype(jnp.float32) + b2, 0.0)
    return jnp.sum(h2 * w3, axis=-1, keepdims=True) + b3


if __name__ == "__main__":
    key = jax.random.PRNGKey(0)
    k_params, k_state = jax.random.split(key)

    batch, state_dim = 10, 32   # non-multiple-of-8 batch exercises padding + 2-tile grid
    params = init_params(k_params, state_dim)
    state = jax.random.normal(k_state, (batch, state_dim), jnp.float32)

    out = value_forward(state, params)
    out = jax.block_until_ready(out)

    ref = value_forward_ref(state, params)
    assert out.shape == (batch, 1), out.shape
    # Activations are quantized to bf16 before the two MXU matmuls
    # (accumulation and the final layer stay f32) -> loosened tolerance.
    assert jnp.allclose(out, ref, atol=5e-2, rtol=5e-2), (
        "mismatch vs reference: max abs err = "
        f"{float(jnp.max(jnp.abs(out - ref)))}")

    print("KERNEL_OK")
</pallas_src>

<mosaic_0001>
module attributes {stable_mosaic.version = 11 : i64} {
  func.func @value_mlp_kernel(%arg0: i32, %arg1: memref<8x32xf32, #tpu.memory_space<vmem>>, %arg2: memref<32x256xbf16, #tpu.memory_space<vmem>>, %arg3: memref<1x256xf32, #tpu.memory_space<vmem>>, %arg4: memref<256x256xbf16, #tpu.memory_space<vmem>>, %arg5: memref<1x256xf32, #tpu.memory_space<vmem>>, %arg6: memref<1x256xf32, #tpu.memory_space<vmem>>, %arg7: memref<1x1xf32, #tpu.memory_space<vmem>>, %arg8: memref<8x1xf32, #tpu.memory_space<vmem>>) attributes {dimension_semantics = [#tpu.dimension_semantics<parallel>], iteration_bounds = array<i64: 2>, scalar_prefetch = 0 : i64, scratch_operands = 0 : i64, tpu.core_type = #tpu.core_type<tc>, window_params = [{transform_indices = @transform_0, window_bounds = array<i64: 8, 32>}, {pipeline_mode = #tpu.pipeline_mode<synchronous>, transform_indices = @transform_1, window_bounds = array<i64: 32, 256>}, {pipeline_mode = #tpu.pipeline_mode<synchronous>, transform_indices = @transform_2, window_bounds = array<i64: 1, 256>}, {pipeline_mode = #tpu.pipeline_mode<synchronous>, transform_indices = @transform_3, window_bounds = array<i64: 256, 256>}, {pipeline_mode = #tpu.pipeline_mode<synchronous>, transform_indices = @transform_4, window_bounds = array<i64: 1, 256>}, {pipeline_mode = #tpu.pipeline_mode<synchronous>, transform_indices = @transform_5, window_bounds = array<i64: 1, 256>}, {pipeline_mode = #tpu.pipeline_mode<synchronous>, transform_indices = @transform_6, window_bounds = array<i64: 1, 1>}, {transform_indices = @transform_7, window_bounds = array<i64: 8, 1>}]} {
    %c0 = arith.constant 0 : index
    %c0_0 = arith.constant 0 : index
    %0 = vector.load %arg1[%c0, %c0_0] : memref<8x32xf32, #tpu.memory_space<vmem>>, vector<8x32xf32>
    %1 = arith.truncf %0 : vector<8x32xf32> to vector<8x32xbf16>
    %c0_1 = arith.constant 0 : index
    %c0_2 = arith.constant 0 : index
    %2 = vector.load %arg2[%c0_1, %c0_2] : memref<32x256xbf16, #tpu.memory_space<vmem>>, vector<32x256xbf16>
    %cst = arith.constant dense<0.000000e+00> : vector<8x256xf32>
    %3 = tpu.matmul %1, %2, %cst {dimension_numbers = #tpu.dot_dimension_numbers<[1], [0], [0], [1], [0, 0, 1, 1], [], []>} : vector<8x32xbf16>, vector<32x256xbf16>, vector<8x256xf32> -> vector<8x256xf32>
    %c0_3 = arith.constant 0 : index
    %c0_4 = arith.constant 0 : index
    %4 = vector.load %arg3[%c0_3, %c0_4] : memref<1x256xf32, #tpu.memory_space<vmem>>, vector<1x256xf32>
    %5 = vector.broadcast %4 : vector<1x256xf32> to vector<8x256xf32>
    %6 = arith.addf %3, %5 : vector<8x256xf32>
    %cst_5 = arith.constant 0.000000e+00 : f32
    %7 = vector.broadcast %cst_5 : f32 to vector<8x256xf32>
    %8 = arith.maximumf %6, %7 : vector<8x256xf32>
    %9 = arith.truncf %8 : vector<8x256xf32> to vector<8x256xbf16>
    %c0_6 = arith.constant 0 : index
    %c0_7 = arith.constant 0 : index
    %10 = vector.load %arg4[%c0_6, %c0_7] : memref<256x256xbf16, #tpu.memory_space<vmem>>, vector<256x256xbf16>
    %cst_8 = arith.constant dense<0.000000e+00> : vector<8x256xf32>
    %11 = tpu.matmul %9, %10, %cst_8 {dimension_numbers = #tpu.dot_dimension_numbers<[1], [0], [0], [1], [0, 0, 1, 1], [], []>} : vector<8x256xbf16>, vector<256x256xbf16>, vector<8x256xf32> -> vector<8x256xf32>
    %c0_9 = arith.constant 0 : index
    %c0_10 = arith.constant 0 : index
    %12 = vector.load %arg5[%c0_9, %c0_10] : memref<1x256xf32, #tpu.memory_space<vmem>>, vector<1x256xf32>
    %13 = vector.broadcast %12 : vector<1x256xf32> to vector<8x256xf32>
    %14 = arith.addf %11, %13 : vector<8x256xf32>
    %cst_11 = arith.constant 0.000000e+00 : f32
    %15 = vector.broadcast %cst_11 : f32 to vector<8x256xf32>
    %16 = arith.maximumf %14, %15 : vector<8x256xf32>
    %c0_12 = arith.constant 0 : index
    %c0_13 = arith.constant 0 : index
    %17 = vector.load %arg6[%c0_12, %c0_13] : memref<1x256xf32, #tpu.memory_space<vmem>>, vector<1x256xf32>
    %18 = vector.broadcast %17 : vector<1x256xf32> to vector<8x256xf32>
    %19 = arith.mulf %16, %18 : vector<8x256xf32>
    %cst_14 = arith.constant dense<0.000000e+00> : vector<8xf32>
    %20 = vector.multi_reduction <add>, %19, %cst_14 [1] : vector<8x256xf32> to vector<8xf32>
    %21 = vector.shape_cast %20 : vector<8xf32> to vector<8x1xf32>
    %c0_15 = arith.constant 0 : index
    %c0_16 = arith.constant 0 : index
    %22 = vector.load %arg7[%c0_15, %c0_16] : memref<1x1xf32, #tpu.memory_space<vmem>>, vector<1x1xf32>
    %23 = vector.broadcast %22 : vector<1x1xf32> to vector<8x1xf32>
    %24 = arith.addf %21, %23 : vector<8x1xf32>
    %c0_17 = arith.constant 0 : index
    %c0_18 = arith.constant 0 : index
    %25 = vector.load %arg8[%c0_17, %c0_18] : memref<8x1xf32, #tpu.memory_space<vmem>>, vector<8x1xf32>
    tpu.vector_store %arg8[%c0_17, %c0_18], %24 {strides = array<i32>} : memref<8x1xf32, #tpu.memory_space<vmem>>, vector<8x1xf32>,
    return
  }
  func.func @transform_0(%arg0: i32) -> (i32, i32) {
    %c0_i32 = arith.constant 0 : i32
    %c0_i32_0 = arith.constant 0 : i32
    return %arg0, %c0_i32 : i32, i32
  }
  func.func @transform_1(%arg0: i32) -> (i32, i32) {
    %c0_i32 = arith.constant 0 : i32
    %c0_i32_0 = arith.constant 0 : i32
    %c0_i32_1 = arith.constant 0 : i32
    return %c0_i32, %c0_i32_0 : i32, i32
  }
  func.func @transform_2(%arg0: i32) -> (i32, i32) {
    %c0_i32 = arith.constant 0 : i32
    %c0_i32_0 = arith.constant 0 : i32
    %c0_i32_1 = arith.constant 0 : i32
    return %c0_i32, %c0_i32_0 : i32, i32
  }
  func.func @transform_3(%arg0: i32) -> (i32, i32) {
    %c0_i32 = arith.constant 0 : i32
    %c0_i32_0 = arith.constant 0 : i32
    %c0_i32_1 = arith.constant 0 : i32
    return %c0_i32, %c0_i32_0 : i32, i32
  }
  func.func @transform_4(%arg0: i32) -> (i32, i32) {
    %c0_i32 = arith.constant 0 : i32
    %c0_i32_0 = arith.constant 0 : i32
    %c0_i32_1 = arith.constant 0 : i32
    return %c0_i32, %c0_i32_0 : i32, i32
  }
  func.func @transform_5(%arg0: i32) -> (i32, i32) {
    %c0_i32 = arith.constant 0 : i32
    %c0_i32_0 = arith.constant 0 : i32
    %c0_i32_1 = arith.constant 0 : i32
    return %c0_i32, %c0_i32_0 : i32, i32
  }
  func.func @transform_6(%arg0: i32) -> (i32, i32) {
    %c0_i32 = arith.constant 0 : i32
    %c0_i32_0 = arith.constant 0 : i32
    %c0_i32_1 = arith.constant 0 : i32
    return %c0_i32, %c0_i32_0 : i32, i32
  }
  func.func @transform_7(%arg0: i32) -> (i32, i32) {
    %c0_i32 = arith.constant 0 : i32
    %c0_i32_0 = arith.constant 0 : i32
    return %arg0, %c0_i32 : i32, i32
  }
}

</mosaic_0001>

<bundles_post_ra>
// kernel: tpu_custom_call.1
= control target key start
LH: loop header
LB: loop body
LE: loop exit
PB: predicated region body
PF: predicated region fallthrough
CT: control target
= control target key end

     0   :  { %s1246_s0 = inlined_call_operand.hbm [shape: f32[16,32], index: 0, kind: input, shape index: {}]   ;;  %s1247_s1 = inlined_call_operand.hbm [shape: bf16[32,256], index: 1, kind: input, shape index: {}]   ;;  %s1248_s2 = inlined_call_operand.vmem [shape: f32[1,256], index: 2, kind: input, shape index: {}]   ;;  %s1249_s3 = inlined_call_operand.hbm [shape: bf16[256,256], index: 3, kind: input, shape index: {}]   ;;  %s1250_s4 = inlined_call_operand.vmem [shape: f32[1,256], index: 4, kind: input, shape index: {}]   ;;  %s1251_s5 = inlined_call_operand.vmem [shape: f32[1,256], index: 5, kind: input, shape index: {}]   ;;  %s1252_s6 = inlined_call_operand.<no memory space> [shape: f32[1,1], index: 6, kind: input, shape index: {}]   ;;  %s1253_s7 = inlined_call_operand.vmem [shape: f32[16,1], index: 7, kind: output, shape index: {}]  }
   0x1   :  { %v12_v0 = vstv %s1252_s6 }
   0x2   :  { %13 = vst [vmem:[#allocation2] sm:$0x1] %v12_v0 }
   0x3   :  { %14 = vsyncpa [#allocation4], 0 }
   0x4   :  { %16 = vsyncpa [#allocation4 + $0x1], 0 }
   0x5   :  { %17 = vsyncpa [#allocation6], 0  ;;  %s1109_s26 = smov 0   ;;  %s1111_s27 = smov 0  }
   0x6   :  { %s1113_s28 = smov 0   ;;  %s1115_s29 = smov 0  }
   0x7 LB: > { %s1128_s6 = sadd.s32 4294967295, %s1058_s29   ;;  %p43_p0 = scmp.ne.s32.totalorder %s1050_s27, %s1046_s26  ;;  %s1058_s29 = sphi %s1115_s29, %s1269_s29   ;;  %s1054_s28 = sphi %s1113_s28, %s1268_s28   ;;  %s1050_s27 = sphi %s1111_s27, %s1267_s27   ;;  %s1046_s26 = sphi %s1109_s26, %s1266_s26  }
   0x8   : > { %p1254_p1 = scmp.eq.s32.totalorder %s1128_s6, 0  ;;  %p772_p2 = scmp.ge.s32.totalorder %s1058_s29, 1 }
   0x9   : > { %p206_p3 = scmp.lt.s32.totalorder %s1058_s29, 3  ;;  %s1060_s9 = smov [#allocation5]  }
   0xa   : > { %p1136_p4 = por %p1254_p1, %p43_p0  ;;  %s218_s10 = sshll.u32 %s1060_s9, 4  ;;  %s219_s10 = int_to_ptr.vmem [resolvable:$true] %s218_s10 }
   0xb   : > { %p1140_p5 = pnand %p772_p2, %p206_p3  ;;  %s1061_s12 = smov [#allocation7]  }
   0xc   : > { %s1257_s30 = scalar_select %p1136_p4, 1, 0 }
   0xd   : > { %s1258_s8 = scalar_select %p1140_p5, 1, 0 }
   0xe   : > { %p833_p6 = pneg %p1140_p5  ;;  %s234_s13 = sshll.u32 %s1061_s12, 4  ;;  %s235_s13 = int_to_ptr.vmem [resolvable:$true] %s234_s13 }
   0xf   : > { %s951_s14 = scalar_lea.vmem %s219_s10, 512  ;;  %p959_p12 = scmp.lt.s32.totalorder %s219_s10, %s219_s10 }
  0x10   : > { %p1148_p7 = pnand %p833_p6, %p1254_p1  ;;  %p952_p9 = scmp.ne.s32.totalorder %s219_s10, %s951_s14 }
  0x11   : > { %p960_p13 = scmp.lt.s32.totalorder %s951_s14, %s951_s14 }
  0x12   : > { %p942_p8 = pneg %p1148_p7 }
  0x13   : > { %p961_p0 = por %p960_p13, %p959_p12 }
  0x14   : > { %p954_p10 = pnand %p952_p9, %p942_p8 }
  0x16   : > { %p955_p11 = pneg %p954_p10 }
  0x18   : > { %p962_p2 = pnand %p961_p0, %p955_p11 }
  0x1a   : > { %965 = shalt.err (!%p962_p2)
}
  0x1b   : > { %s1062_s15 = smov 128   ;;  %s1063_s16 = smov 8  }
  0x1c   : > { %836 = dma.hbm_to_vmem [thread:$0]  (!%p1148_p7), %s1247_s1, 512, %s219_s10, [#allocation6], %s1062_s15, %s1062_s15, %s1063_s16  }
  0x1d   : > { %s977_s19 = scalar_lea.vmem %s235_s13, 4096  ;;  %p985_p10 = scmp.lt.s32.totalorder %s235_s13, %s235_s13 }
  0x1e   : > { %p978_p3 = scmp.ne.s32.totalorder %s235_s13, %s977_s19  ;;  %p986_p1 = scmp.lt.s32.totalorder %s977_s19, %s977_s19 }
  0x20   : > { %p980_p6 = pnand %p978_p3, %p942_p8  ;;  %p987_p12 = por %p986_p1, %p985_p10 }
  0x22   : > { %p981_p9 = pneg %p980_p6 }
  0x24   : > { %p988_p11 = pnand %p987_p12, %p981_p9 }
  0x26   : > { %991 = shalt.err (!%p988_p11)
}
  0x27   : > { %839 = dma.hbm_to_vmem [thread:$0]  (!%p1148_p7), %s1249_s3, 4096, %s235_s13, [#allocation6], %s1062_s15, %s1062_s15, %s1063_s16  }
  0x28   : > { %s1171_s22 = sadd.s32 1, %s1058_s29   ;;  %s30_s23 = sadd.s32 1, %s1054_s28 }
  0x29   : > { %s27_s24 = ssub.s32 %s1058_s29, %s1171_s22  ;;  %p37_p1 = scmp.ne.s32.totalorder %s1054_s28, %s1050_s27 }
  0x2a   : > { %p28_p8 = scmp.eq.s32.totalorder %s27_s24, 0  ;;  %p38_p13 = scmp.eq.s32.totalorder %s1058_s29, 0 }
  0x2b   : > { %p846_p0 = scmp.lt.s32.totalorder %s1058_s29, 2  ;;  %s257_s25 = sand.u32 1, %s1054_s28  }
  0x2c   : > { %s1182_s26 = scalar_select %p28_p8, %s1054_s28, %s30_s23  }
  0x2d   : > { %p39_p2 = por %p38_p13, %p37_p1  ;;  %s776_s9 = sshll.u32 %s257_s25, 3 }
  0x2e   : > { %s777_s10 = sshll.u32 %s1058_s29, 7  ;;  %s261_s13 = scalar_lea.vmem [#allocation3], %s776_s9 }
  0x2f   : > { %s1188_s14 = scalar_lea.hbm %s1246_s0, %s777_s10  ;;  %s268_s15 = sshll.u32 %s261_s13, 4  ;;  %s269_s15 = int_to_ptr.vmem [resolvable:$true] %s268_s15 }
  0x30   : > { %p1190_p7 = pnand %p846_p0, %p39_p2  ;;  %s258_s17 = scalar_lea.sflag [#allocation4], %s257_s25 }
  0x31   : > { %s992_s18 = scalar_lea.hbm %s1188_s14, 128  ;;  %s997_s20 = scalar_lea.hbm %s1246_s0, 256 }
  0x32   : > { %p993_p3 = scmp.ne.s32.totalorder %s1188_s14, %s992_s18  ;;  %p994_p6 = pneg %p1190_p7 }
  0x33   : > { %p998_p12 = scmp.lt.s32.totalorder %s1188_s14, %s1246_s0  ;;  %p999_p11 = scmp.lt.s32.totalorder %s997_s20, %s992_s18 }
  0x34   : > { %p995_p9 = pnand %p994_p6, %p993_p3 }
  0x35   : > { %p1000_p1 = por %p999_p11, %p998_p12 }
  0x36   : > { %p996_p10 = pneg %p995_p9 }
  0x38   : > { %p1001_p8 = pnand %p1000_p1, %p996_p10 }
  0x3a   : > { %1004 = shalt.err (!%p1001_p8)
}
  0x3b   : > { %s1005_s24 = scalar_lea.vmem %s269_s15, 128  ;;  %s1064_s25 = smov [#allocation3]  }
  0x3c   : > { %p1006_p13 = scmp.ne.s32.totalorder %s269_s15, %s1005_s24  ;;  %s1010_s9 = sshll.u32 %s1064_s25, 4  ;;  %s1011_s9 = int_to_ptr.vmem [resolvable:$false] %s1010_s9 }
  0x3d   : > { %s1012_s10 = scalar_lea.vmem %s1011_s9, 256  ;;  %p1013_p3 = scmp.lt.s32.totalorder %s269_s15, %s1011_s9 }
  0x3e   : > { %p1008_p0 = pnand %p1006_p13, %p994_p6  ;;  %p1014_p9 = scmp.lt.s32.totalorder %s1012_s10, %s1005_s24 }
  0x40   : > { %p1009_p2 = pneg %p1008_p0  ;;  %p1015_p4 = por %p1014_p9, %p1013_p3 }
  0x42   : > { %p1016_p5 = pnand %p1015_p4, %p1009_p2 }
  0x44   : > { %1019 = shalt.err (!%p1016_p5)
}
  0x45   : > { %843 = dma.hbm_to_vmem [thread:$0]  (!%p1190_p7), %s1188_s14, 128, %s269_s15, %s258_s17  }
  0x46   : > { %p1261_p10 = scmp.ne.s32.totalorder %s1258_s8, 0 }
  0x47   : > { %s279_s11 = sand.u32 (!%p1261_p10), 1, %s1050_s27   ;;  %p1262_p6 = scmp.ne.s32.totalorder (!%p1261_p10), %s1257_s30, 0 }
  0x48   : > { %277 = sbr.rel (%p1261_p10) target bundleno = 636 (0x27c), region = 48  ;;  %s779_s12 = sshll.u32 (!%p1261_p10), %s279_s11, 3 }
  0x49   : > { %s280_s13 = scalar_lea.sflag (!%p1261_p10), [#allocation4], %s279_s11  ;;  %s283_s18 = scalar_lea.vmem (!%p1261_p10), [#allocation3], %s779_s12 }
  0x4d   : > { %1037 = dma.done.wait (%p1262_p6), %s280_s13, 128  }
  0x4e   : > { %1039 = vsyncadd (%p1262_p6), %s280_s13, 4294967168  ;;  %p1263_p4 = scmp.eq.s32.totalorder %s1128_s6, 0 }
  0x50   : > { %1041 = dma.done.wait (%p1263_p4), [#allocation6], 4608   ;;  %p1264_p5 = pmov %p1263_p4 }
  0x51   : > { %v1065_v1 = vmov 0   ;;  %v886_v2 = vld [vmem:[#allocation5 + $0x14] ss:$8 sps:$4 sm:$0xff]   ;;  %v888_v3 = vld [vmem:[#allocation5 + $0x10] ss:$8 sps:$4 sm:$0xff]   ;;  %vm364_vm0 = vcmask 261120   ;;  %v334_v40 = vlaneseq }
  0x52   : > { %1043 = vsyncadd (%p1264_p5), [#allocation6], 4294962688  ;;  %400 = vmatprep.mubr.bf16.mxu0 %v1065_v1  ;;  %380 = vmatprep.subr.bf16.mxu0 %v886_v2  ;;  %v889_v4 = vld [vmem:[#allocation5 + $0x4] ss:$8 sps:$4 sm:$0xff]   ;;  %v891_v5 = vld [vmem:[#allocation5] ss:$8 sps:$4 sm:$0xff]  }
  0x53   : > { %v326_v6 = vld [vmem:[%s283_s18] sm:$0xff]  ;;  %381 = vmatpush1.bf16.msra.mxu0 %v888_v3  ;;  %v895_v9 = vld [vmem:[#allocation7 + $0x64] ss:$8 sps:$4 sm:$0xff]   ;;  %v897_v11 = vld [vmem:[#allocation7 + $0x60] ss:$8 sps:$4 sm:$0xff]   ;;  %v335_v41 = vshrl.u32 %v334_v40, 7 }
  0x54   : > { %v892_v7 = vld [vmem:[#allocation7 + $0x74] ss:$8 sps:$4 sm:$0xff]   ;;  %382 = vmatprep.subr.bf16.mxu0 %v889_v4  ;;  %v894_v8 = vld [vmem:[#allocation7 + $0x70] ss:$8 sps:$4 sm:$0xff]   ;;  %v327_v10 = vpack.c.bf16 %v326_v6, %v326_v6  ;;  %v901_v14 = vld [vmem:[#allocation7 + $0x44] ss:$8 sps:$4 sm:$0xff]  }
  0x55   : > { %617 = vmatprep.subr.bf16.mxu1 %v892_v7  ;;  %v898_v12 = vld [vmem:[#allocation7 + $0x54] ss:$8 sps:$4 sm:$0xff]   ;;  %v900_v13 = vld [vmem:[#allocation7 + $0x50] ss:$8 sps:$4 sm:$0xff]   ;;  %v903_v15 = vld [vmem:[#allocation7 + $0x40] ss:$8 sps:$4 sm:$0xff]  }
  0x56   : > { %618 = vmatpush1.bf16.msra.mxu1 %v894_v8  ;;  %v904_v16 = vld [vmem:[#allocation7 + $0x34] ss:$8 sps:$4 sm:$0xff]   ;;  %v906_v17 = vld [vmem:[#allocation7 + $0x30] ss:$8 sps:$4 sm:$0xff]   ;;  %v907_v18 = vld [vmem:[#allocation7 + $0x24] ss:$8 sps:$4 sm:$0xff]  }
  0x57   : > { %383 = vmatpush1.bf16.msra.mxu0 %v891_v5  ;;  %619 = vmatprep.subr.bf16.mxu1 %v895_v9  ;;  %v909_v19 = vld [vmem:[#allocation7 + $0x20] ss:$8 sps:$4 sm:$0xff]   ;;  %v910_v20 = vld [vmem:[#allocation7 + $0x14] ss:$8 sps:$4 sm:$0xff]   ;;  %v912_v21 = vld [vmem:[#allocation7 + $0x10] ss:$8 sps:$4 sm:$0xff]  }
  0x58   : > { %v913_v22 = vld [vmem:[#allocation7 + $0x4] ss:$8 sps:$4 sm:$0xff]   ;;  %v915_v23 = vld [vmem:[#allocation7] ss:$8 sps:$4 sm:$0xff]   ;;  %v916_v24 = vld [vmem:[#allocation7 + $0xf4] ss:$8 sps:$4 sm:$0xff]  }
  0x59   : > { %v918_v25 = vld [vmem:[#allocation7 + $0xf0] ss:$8 sps:$4 sm:$0xff]   ;;  %v919_v26 = vld [vmem:[#allocation7 + $0xe4] ss:$8 sps:$4 sm:$0xff]   ;;  %v921_v27 = vld [vmem:[#allocation7 + $0xe0] ss:$8 sps:$4 sm:$0xff]  }
  0x5a   : > { %787 = vmatmul.mubr.msk.bf16.vlgmr.msra.gmra.mxu0 %vm364_vm0, %v327_v10  ;;  %620 = vmatpush1.bf16.msra.mxu1 %v897_v11  ;;  %v922_v28 = vld [vmem:[#allocation7 + $0xd4] ss:$8 sps:$4 sm:$0xff]   ;;  %v924_v29 = vld [vmem:[#allocation7 + $0xd0] ss:$8 sps:$4 sm:$0xff]   ;;  %v925_v30 = vld [vmem:[#allocation7 + $0xc4] ss:$8 sps:$4 sm:$0xff]  }
  0x5b   : > { %621 = vmatprep.subr.bf16.mxu1 %v898_v12  ;;  %v927_v31 = vld [vmem:[#allocation7 + $0xc0] ss:$8 sps:$4 sm:$0xff]   ;;  %v928_v32 = vld [vmem:[#allocation7 + $0xb4] ss:$8 sps:$4 sm:$0xff]   ;;  %v930_v33 = vld [vmem:[#allocation7 + $0xb0] ss:$8 sps:$4 sm:$0xff]  }
  0x5c   : > { %v931_v34 = vld [vmem:[#allocation7 + $0xa4] ss:$8 sps:$4 sm:$0xff]   ;;  %v933_v35 = vld [vmem:[#allocation7 + $0xa0] ss:$8 sps:$4 sm:$0xff]   ;;  %v934_v36 = vld [vmem:[#allocation7 + $0x94] ss:$8 sps:$4 sm:$0xff]  }
  0x5d   : > { %v936_v37 = vld [vmem:[#allocation7 + $0x90] ss:$8 sps:$4 sm:$0xff]   ;;  %v937_v38 = vld [vmem:[#allocation7 + $0x84] ss:$8 sps:$4 sm:$0xff]   ;;  %v939_v39 = vld [vmem:[#allocation7 + $0x80] ss:$8 sps:$4 sm:$0xff]  }
  0x5e   : > { %622 = vmatpush1.bf16.msra.mxu1 %v900_v13  ;;  %v336_v42 = vsub.s32 0, %v335_v41  ;;  %v332_v43 = vld [vmem:[%s1248_s2] sm:$0x3]  ;;  %v340_v44 = vsub.s32 1, %v335_v41  ;;  %p321_p7 = scmp.lt.s32.totalorder %s1128_s6, 1  ;;  %vm685_vm1 = vcmask 7168  }
  0x5f   : > { %623 = vmatprep.subr.bf16.mxu1 %v901_v14  ;;  %v445_v57 = vld [vmem:[%s1250_s4] sm:$0x3] }
  0x60   : > { %v337_v45 = vrot.slane %v332_v43, %v336_v42  ;;  %v341_v46 = vrot.slane %v332_v43, %v340_v44  ;;  %v450_v58 = vrot.slane %v445_v57, %v336_v42  ;;  %v454_v59 = vrot.slane %v445_v57, %v340_v44  ;;  %v660_v61 = vld [vmem:[%s1251_s5] sm:$0x3]  ;;  %s1271_s6 = smov (!%p321_p7, %s1128_s6), 1 }
  0x61   : > { %v665_v2 = vrot.slane %v660_v61, %v336_v42  ;;  %v669_v3 = vrot.slane %v660_v61, %v340_v44  ;;  %s782_s29 = sshll.u32 %s1271_s6, 3  ;;  %v820_v10 = vld [vmem:[#allocation2] ss:$0 sm:$0xff] }
  0x62   : > { %624 = vmatpush1.bf16.msra.mxu1 %v903_v15  ;;  %s324_s21 = scalar_lea.vmem %s1253_s7, %s782_s29 }
  0x63   : > { %625 = vmatprep.subr.bf16.mxu1 %v904_v16 }
  0x66   : > { %626 = vmatpush1.bf16.msra.mxu1 %v906_v17 }
  0x67   : > { %627 = vmatprep.subr.bf16.mxu1 %v907_v18 }
  0x6a   : > { %628 = vmatpush1.bf16.msra.mxu1 %v909_v19 }
  0x6b   : > { %629 = vmatprep.subr.bf16.mxu1 %v910_v20 }
  0x6e   : > { %630 = vmatpush1.bf16.msra.mxu1 %v912_v21 }
  0x6f   : > { %631 = vmatprep.subr.bf16.mxu1 %v913_v22 }
  0x72   : > { %632 = vmatpush1.bf16.msra.mxu1 %v915_v23 }
  0x73   : > { %633 = vmatprep.subr.bf16.mxu1 %v916_v24 }
  0x76   : > { %634 = vmatpush2.bf16.msra.mxu1 %v918_v25 }
  0x77   : > { %635 = vmatprep.subr.bf16.mxu1 %v919_v26 }
  0x7a   : > { %636 = vmatpush2.bf16.msra.mxu1 %v921_v27 }
  0x7b   : > { %637 = vmatprep.subr.bf16.mxu1 %v922_v28 }
  0x7e   : > { %638 = vmatpush2.bf16.msra.mxu1 %v924_v29 }
  0x7f   : > { %639 = vmatprep.subr.bf16.mxu1 %v925_v30 }
  0x82   : > { %640 = vmatpush2.bf16.msra.mxu1 %v927_v31 }
  0x83   : > { %641 = vmatprep.subr.bf16.mxu1 %v928_v32 }
  0x86   : > { %642 = vmatpush2.bf16.msra.mxu1 %v930_v33 }
  0x87   : > { %643 = vmatprep.subr.bf16.mxu1 %v931_v34 }
  0x8a   : > { %644 = vmatpush2.bf16.msra.mxu1 %v933_v35 }
  0x8b   : > { %645 = vmatprep.subr.bf16.mxu1 %v934_v36 }
  0x8e   : > { %646 = vmatpush2.bf16.msra.mxu1 %v936_v37 }
  0x8f   : > { %647 = vmatprep.subr.bf16.mxu1 %v937_v38 }
  0x92   : > { %648 = vmatpush2.bf16.msra.mxu1 %v939_v39 }
 0x11a   : > { %v402_v47 = vpop.f32.mrf.mxu0 }
 0x11b   : > { %v403_v48 = vadd.f32 %v402_v47, %v337_v45 }
 0x11c   : > { %v404_v49 = vpop.f32.mrf.mxu0 }
 0x11d   : > { %v405_v50 = vadd.f32 %v404_v49, %v341_v46  ;;  %v409_v51 = vmax.f32 %v403_v48, 0.0 }
 0x11e   : > { %v406_v52 = vpop.f32.mrf.mxu0 }
 0x11f   : > { %v410_v53 = vmax.f32 %v405_v50, 0.0  ;;  %v411_v56 = vpack.c.bf16 %v409_v51, %v409_v51 }
 0x120   : > { %v407_v54 = vpop.f32.mrf.mxu0 }
 0x121   : > { %v412_v55 = vpack.c.bf16 %v410_v53, %v410_v53 }
 0x123   : > { %649 = vmatprep.mubr.bf16.mxu1 %v412_v55 }
 0x124   : > { %650 = vmatmul.mubr.bf16.vlgmr.msra.gmra.mxu1 %v411_v56 }
 0x1e4   : > { %v651_v60 = vpop.f32.mrf.mxu1 }
 0x1e5   : > { %v652_v62 = vadd.f32 %v651_v60, %v450_v58 }
 0x1e6   : > { %v653_v63 = vpop.f32.mrf.mxu1 }
 0x1e7   : > { %v658_v0 = vmax.f32 %v652_v62, 0.0  ;;  %v654_v1 = vadd.f32 %v653_v63, %v454_v59 }
 0x1e8   : > { %v655_v4 = vpop.f32.mrf.mxu1 }
 0x1e9   : > { %v659_v5 = vmax.f32 %v654_v1, 0.0  ;;  %v672_v7 = vmul.f32 %v665_v2, %v658_v0 }
 0x1ea   : > { %v656_v6 = vpop.f32.mrf.mxu1 }
 0x1eb   : > { %v673_v8 = vmul.f32 %v669_v3, %v659_v5 }
 0x1ed   : > { %v674_v9 = vadd.f32 %v673_v8, %v672_v7 }
 0x1ef   : > { %675 = vadd.xlane.f32.xlu0 %v674_v9 }
 0x278   : > { %v676_v11 = vpop.xlane.xlu0 %675 }
 0x279   : > { %v684_v12 = vadd.f32 %v820_v10, %v676_v11 }
 0x27b   : > { %686 = vst.msk [vmem:[%s324_s21] sm:$0xff] %vm685_vm1, %v684_v12 }
 0x27c PF: > { %s1265_s23 = smov %s1182_s26  ;;  %p20_p12 = scmp.ge.s32.totalorder %s1171_s22, 4  }
 0x27d   : > { %s1266_s26 = smov %s1050_s27  ;;  %s1267_s27 = smov %s1054_s28 }
 0x27e   : > { %s1268_s28 = smov %s1265_s23  ;;  %s1269_s29 = smov %s1171_s22 }
 0x27f   :  { %22 = sbr.rel (!%p20_p12) target bundleno = 7 (0x7), region = 96 }
 0x284   :  { %706 = vsyncpa [#allocation4], 1 }
 0x285   :  { %708 = vsyncpa [#allocation4 + $0x1], 1 }
 0x286   :  { %709 = vsyncpa [#allocation6], 1 }

</bundles_post_ra>
